<compile_context>
chip_gen: v5e
topology: v5e:2x2
jax: 0.10.0
libtpu: 0.0.40
codegen_flags: <defaults>
</compile_context>

<pallas_src>
import jax
import jax.numpy as jnp
from jax.experimental import pallas as pl
from jax.experimental.pallas import tpu as pltpu


def _round_up(x, m):
    return (x + m - 1) // m * m


def _cdiv(a, b):
    return -(-a // b)


def _head_kernel(x_ref, w_ref, b_ref, s_ref, o_ref, n_ref):
    # x_ref: (TB, Kp) bf16  -- NHWC-flattened features (k = p*C + c), zero-padded
    # w_ref: (Kp, Ep) bf16  -- BN2d-scale-folded, NHWC-reordered linear weight
    # b_ref: (1, Ep)  f32   -- folded bias (lin bias + BN2d beta term - BN1d mean)
    # s_ref: (1, Ep)  f32   -- BN1d inverse std (applied post-matmul in f32)
    # o_ref: (TB, Ep) f32   -- L2-normalized embedding
    # n_ref: (TB, 1)  f32   -- L2 norm
    y = jnp.dot(x_ref[...], w_ref[...], preferred_element_type=jnp.float32)
    y = (y + b_ref[...]) * s_ref[...]
    sq = jnp.sum(y * y, axis=-1, keepdims=True)          # padded E columns are exactly 0
    n_ref[...] = jnp.sqrt(sq)
    o_ref[...] = y * jax.lax.rsqrt(sq)


def _pick_tiling(batch, kp, ep, x_buffers):
    """Per-generation batch tile + scoped-VMEM limit."""
    try:
        vmem_cap = int(pltpu.get_tpu_info().vmem_capacity_bytes)
    except Exception:  # interpret mode / API unavailable
        vmem_cap = 64 << 20
    # ~96 MiB on v5e/v6e (128 MiB physical), ~56 MiB on v7x (64 MiB per TC).
    vmem_limit = min(vmem_cap - (8 << 20), 96 << 20)

    resident = kp * ep * 2 + 2 * ep * 4            # W' (bf16, single-buffered) + bias + s1
    budget = int(vmem_limit * 0.85) - resident
    b_cap = _round_up(batch, 8)
    tile_b = 8
    for cand in (512, 256, 128, 64, 32, 16, 8):
        if cand > b_cap:
            continue
        need = (x_buffers * cand * kp * 2          # x tiles (bf16, multi-buffered)
                + 2 * cand * ep * 4                # output tiles (f32, double-buffered)
                + 2 * cand * 128 * 4)              # norm tiles (lane-padded)
        if need <= budget:
            tile_b = cand
            break
    # Keep >= 2 grid steps so ("parallel",) can shard the batch over v7x's 2 TCs.
    if b_cap > 8 and _cdiv(b_cap, tile_b) < 2:
        tile_b = max(8, _round_up(_cdiv(b_cap, 2), 8))
    return tile_b, vmem_limit


def head_forward(x_nhwc, bn2_gamma, bn2_beta, bn2_mean, bn2_var,
                 lin_weight, lin_bias, bn1_mean, bn1_var,
                 eps=1e-5, x_buffers=3):
    """output_layer + L2-norm of Backbone on a (B, 7, 7, C) NHWC feature map."""
    B, H, W, C = x_nhwc.shape
    assert (H, W) == (7, 7), "output_layer of Backbone(input_size=112) expects a 7x7 map"
    P = H * W
    E = lin_weight.shape[0]
    K = P * C
    assert lin_weight.shape[1] == K

    # ---- Fold eval-mode BN statistics (one-time, plain JAX glue) ----
    s2 = bn2_gamma.astype(jnp.float32) / jnp.sqrt(bn2_var.astype(jnp.float32) + eps)  # (C,)
    b2 = bn2_beta.astype(jnp.float32) - bn2_mean.astype(jnp.float32) * s2             # (C,)
    s1 = 1.0 / jnp.sqrt(bn1_var.astype(jnp.float32) + eps)                            # (E,)

    wt = lin_weight.astype(jnp.float32).reshape(E, C, P)                  # [e, c, p]
    # Reorder the PyTorch (c-major) flatten weight to the NHWC flatten order
    # k = p*C + c, with the per-channel BN2d scale folded in.
    w_eff = jnp.transpose(wt * s2[None, :, None], (2, 1, 0)).reshape(K, E)  # (K, E)
    b_pre = (jnp.einsum('c,ecp->e', b2, wt) + lin_bias.astype(jnp.float32)
             - bn1_mean.astype(jnp.float32))                                # (E,)

    # ---- Lane-dense padding (K, E -> x128; B -> x tile_b). For the production
    #      C=512 / E=512 the K/E pads are no-ops; x is only copied if the batch
    #      needs padding to the tile.
    Kp = _round_up(K, 128)
    Ep = _round_up(E, 128)
    tile_b, vmem_limit = _pick_tiling(B, Kp, Ep, x_buffers)
    Bp = _round_up(B, tile_b)
    grid_steps = Bp // tile_b
    x_buffers_eff = min(x_buffers, max(2, grid_steps))

    x_flat = x_nhwc.astype(jnp.bfloat16).reshape(B, K)    # free reshape when already bf16
    if Kp != K or Bp != B:
        x_flat = jnp.pad(x_flat, ((0, Bp - B), (0, Kp - K)))

    w_pad = jnp.zeros((Kp, Ep), jnp.bfloat16).at[:K, :E].set(w_eff.astype(jnp.bfloat16))
    b_pad = jnp.zeros((1, Ep), jnp.float32).at[0, :E].set(b_pre)
    s_pad = jnp.zeros((1, Ep), jnp.float32).at[0, :E].set(s1)

    cost = pl.CostEstimate(
        flops=2 * Bp * Kp * Ep,
        transcendentals=2 * Bp,
        bytes_accessed=(Bp * Kp * 2 + Kp * Ep * 2 + 2 * Ep * 4
                        + Bp * Ep * 4 + Bp * 4),
    )

    out, norm = pl.pallas_call(
        _head_kernel,
        out_shape=(jax.ShapeDtypeStruct((Bp, Ep), jnp.float32),
                   jax.ShapeDtypeStruct((Bp, 1), jnp.float32)),
        grid=(grid_steps,),
        in_specs=[
            pl.BlockSpec((tile_b, Kp), lambda i: (i, 0),
                         pipeline_mode=pl.Buffered(x_buffers_eff)),   # x: tiled over B
            pl.BlockSpec((Kp, Ep), lambda i: (0, 0),
                         pipeline_mode=pl.Buffered(1)),               # W'   (resident)
            pl.BlockSpec((1, Ep), lambda i: (0, 0),
                         pipeline_mode=pl.Buffered(1)),               # bias (resident)
            pl.BlockSpec((1, Ep), lambda i: (0, 0),
                         pipeline_mode=pl.Buffered(1)),               # s1   (resident)
        ],
        out_specs=(pl.BlockSpec((tile_b, Ep), lambda i: (i, 0)),
                   pl.BlockSpec((tile_b, 1), lambda i: (i, 0))),
        compiler_params=pltpu.CompilerParams(
            dimension_semantics=("parallel",),
            vmem_limit_bytes=vmem_limit,
        ),
        cost_estimate=cost,
    )(x_flat, w_pad, b_pad, s_pad)

    return out[:B, :E], norm[:B, :]


def head_reference(x_nchw, bn2_gamma, bn2_beta, bn2_mean, bn2_var,
                   lin_weight, lin_bias, bn1_mean, bn1_var, eps=1e-5):
    """Pure-JAX reference mirroring the PyTorch output_layer + L2-norm (eval mode)."""
    B, C, H, W = x_nchw.shape
    x2 = ((x_nchw - bn2_mean[None, :, None, None])
          / jnp.sqrt(bn2_var[None, :, None, None] + eps)
          * bn2_gamma[None, :, None, None] + bn2_beta[None, :, None, None])
    flat = x2.reshape(B, C * H * W)                       # PyTorch Flatten (channel-major)
    y = flat @ lin_weight.T + lin_bias
    y = (y - bn1_mean) / jnp.sqrt(bn1_var + eps)
    norm = jnp.sqrt(jnp.sum(y * y, axis=1, keepdims=True))
    return y / norm, norm


if __name__ == "__main__":
    B, C, E = 12, 4, 32
    H = W = 7
    key = jax.random.PRNGKey(0)
    ks = jax.random.split(key, 9)

    x_nchw = jax.random.normal(ks[0], (B, C, H, W), dtype=jnp.float32)
    bn2_gamma = 1.0 + 0.1 * jax.random.normal(ks[1], (C,), dtype=jnp.float32)
    bn2_beta = 0.1 * jax.random.normal(ks[2], (C,), dtype=jnp.float32)
    bn2_mean = 0.05 * jax.random.normal(ks[3], (C,), dtype=jnp.float32)
    bn2_var = jnp.abs(1.0 + 0.1 * jax.random.normal(ks[4], (C,), dtype=jnp.float32))
    lin_weight = jax.random.normal(ks[5], (E, C * H * W), dtype=jnp.float32) / jnp.sqrt(C * H * W)
    lin_bias = 0.1 * jax.random.normal(ks[6], (E,), dtype=jnp.float32)
    bn1_mean = 0.05 * jax.random.normal(ks[7], (E,), dtype=jnp.float32)
    bn1_var = jnp.abs(1.0 + 0.1 * jax.random.normal(ks[8], (E,), dtype=jnp.float32))

    # The backbone body would emit NHWC bf16 directly; emulate that here
    # (this transpose/cast is test glue, not part of the kernel's hot path).
    x_nhwc = jnp.transpose(x_nchw, (0, 2, 3, 1)).astype(jnp.bfloat16)

    out, norm = head_forward(x_nhwc, bn2_gamma, bn2_beta, bn2_mean, bn2_var,
                             lin_weight, lin_bias, bn1_mean, bn1_var)
    out = jax.block_until_ready(out)
    norm = jax.block_until_ready(norm)
    assert out.shape == (B, E) and norm.shape == (B, 1)

    # Reference on the bf16-rounded input (what the kernel actually consumes);
    # tolerance covers the bf16 MXU operands with f32 accumulation.
    x_q = x_nchw.astype(jnp.bfloat16).astype(jnp.float32)
    ref_out, ref_norm = head_reference(x_q, bn2_gamma, bn2_beta, bn2_mean, bn2_var,
                                       lin_weight, lin_bias, bn1_mean, bn1_var)
    assert jnp.allclose(out, ref_out, atol=3e-2, rtol=3e-2), "output mismatch vs reference"
    assert jnp.allclose(norm, ref_norm, atol=3e-2, rtol=3e-2), "norm mismatch vs reference"

    print("KERNEL_OK")
</pallas_src>

<mosaic_0001>
module attributes {stable_mosaic.version = 11 : i64} {
  func.func @_head_kernel(%arg0: i32, %arg1: memref<8x256xbf16, #tpu.memory_space<vmem>>, %arg2: memref<256x128xbf16, #tpu.memory_space<vmem>>, %arg3: memref<1x128xf32, #tpu.memory_space<vmem>>, %arg4: memref<1x128xf32, #tpu.memory_space<vmem>>, %arg5: memref<8x128xf32, #tpu.memory_space<vmem>>, %arg6: memref<8x1xf32, #tpu.memory_space<vmem>>) attributes {dimension_semantics = [#tpu.dimension_semantics<parallel>], iteration_bounds = array<i64: 2>, scalar_prefetch = 0 : i64, scratch_operands = 0 : i64, tpu.core_type = #tpu.core_type<tc>, window_params = [{pipeline_mode = #tpu.pipeline_mode<double_buffered>, transform_indices = @transform_0, window_bounds = array<i64: 8, 256>}, {pipeline_mode = #tpu.pipeline_mode<synchronous>, transform_indices = @transform_1, window_bounds = array<i64: 256, 128>}, {pipeline_mode = #tpu.pipeline_mode<synchronous>, transform_indices = @transform_2, window_bounds = array<i64: 1, 128>}, {pipeline_mode = #tpu.pipeline_mode<synchronous>, transform_indices = @transform_3, window_bounds = array<i64: 1, 128>}, {transform_indices = @transform_4, window_bounds = array<i64: 8, 128>}, {transform_indices = @transform_5, window_bounds = array<i64: 8, 1>}]} {
    %c0 = arith.constant 0 : index
    %c0_0 = arith.constant 0 : index
    %0 = vector.load %arg1[%c0, %c0_0] : memref<8x256xbf16, #tpu.memory_space<vmem>>, vector<8x256xbf16>
    %c0_1 = arith.constant 0 : index
    %c0_2 = arith.constant 0 : index
    %1 = vector.load %arg2[%c0_1, %c0_2] : memref<256x128xbf16, #tpu.memory_space<vmem>>, vector<256x128xbf16>
    %cst = arith.constant dense<0.000000e+00> : vector<8x128xf32>
    %2 = tpu.matmul %0, %1, %cst {dimension_numbers = #tpu.dot_dimension_numbers<[1], [0], [0], [1], [0, 0, 1, 1], [], []>} : vector<8x256xbf16>, vector<256x128xbf16>, vector<8x128xf32> -> vector<8x128xf32>
    %c0_3 = arith.constant 0 : index
    %c0_4 = arith.constant 0 : index
    %3 = vector.load %arg3[%c0_3, %c0_4] : memref<1x128xf32, #tpu.memory_space<vmem>>, vector<1x128xf32>
    %4 = vector.broadcast %3 : vector<1x128xf32> to vector<8x128xf32>
    %5 = arith.addf %2, %4 : vector<8x128xf32>
    %c0_5 = arith.constant 0 : index
    %c0_6 = arith.constant 0 : index
    %6 = vector.load %arg4[%c0_5, %c0_6] : memref<1x128xf32, #tpu.memory_space<vmem>>, vector<1x128xf32>
    %7 = vector.broadcast %6 : vector<1x128xf32> to vector<8x128xf32>
    %8 = arith.mulf %5, %7 : vector<8x128xf32>
    %9 = arith.mulf %8, %8 : vector<8x128xf32>
    %cst_7 = arith.constant dense<0.000000e+00> : vector<8xf32>
    %10 = vector.multi_reduction <add>, %9, %cst_7 [1] : vector<8x128xf32> to vector<8xf32>
    %11 = vector.shape_cast %10 : vector<8xf32> to vector<8x1xf32>
    %12 = math.sqrt %11 : vector<8x1xf32>
    %c0_8 = arith.constant 0 : index
    %c0_9 = arith.constant 0 : index
    %13 = vector.load %arg6[%c0_8, %c0_9] : memref<8x1xf32, #tpu.memory_space<vmem>>, vector<8x1xf32>
    tpu.vector_store %arg6[%c0_8, %c0_9], %12 {strides = array<i32>} : memref<8x1xf32, #tpu.memory_space<vmem>>, vector<8x1xf32>,
    %14 = math.rsqrt %11 : vector<8x1xf32>
    %15 = vector.broadcast %14 : vector<8x1xf32> to vector<8x128xf32>
    %16 = arith.mulf %8, %15 : vector<8x128xf32>
    %c0_10 = arith.constant 0 : index
    %c0_11 = arith.constant 0 : index
    %17 = vector.load %arg5[%c0_10, %c0_11] : memref<8x128xf32, #tpu.memory_space<vmem>>, vector<8x128xf32>
    tpu.vector_store %arg5[%c0_10, %c0_11], %16 {strides = array<i32>} : memref<8x128xf32, #tpu.memory_space<vmem>>, vector<8x128xf32>,
    return
  }
  func.func @transform_0(%arg0: i32) -> (i32, i32) {
    %c0_i32 = arith.constant 0 : i32
    %c0_i32_0 = arith.constant 0 : i32
    return %arg0, %c0_i32 : i32, i32
  }
  func.func @transform_1(%arg0: i32) -> (i32, i32) {
    %c0_i32 = arith.constant 0 : i32
    %c0_i32_0 = arith.constant 0 : i32
    %c0_i32_1 = arith.constant 0 : i32
    return %c0_i32, %c0_i32_0 : i32, i32
  }
  func.func @transform_2(%arg0: i32) -> (i32, i32) {
    %c0_i32 = arith.constant 0 : i32
    %c0_i32_0 = arith.constant 0 : i32
    %c0_i32_1 = arith.constant 0 : i32
    return %c0_i32, %c0_i32_0 : i32, i32
  }
  func.func @transform_3(%arg0: i32) -> (i32, i32) {
    %c0_i32 = arith.constant 0 : i32
    %c0_i32_0 = arith.constant 0 : i32
    %c0_i32_1 = arith.constant 0 : i32
    return %c0_i32, %c0_i32_0 : i32, i32
  }
  func.func @transform_4(%arg0: i32) -> (i32, i32) {
    %c0_i32 = arith.constant 0 : i32
    %c0_i32_0 = arith.constant 0 : i32
    return %arg0, %c0_i32 : i32, i32
  }
  func.func @transform_5(%arg0: i32) -> (i32, i32) {
    %c0_i32 = arith.constant 0 : i32
    %c0_i32_0 = arith.constant 0 : i32
    return %arg0, %c0_i32 : i32, i32
  }
}

</mosaic_0001>

<bundles_post_ra>
// kernel: tpu_custom_call.1
= control target key start
LH: loop header
LB: loop body
LE: loop exit
PB: predicated region body
PF: predicated region fallthrough
CT: control target
= control target key end

     0   :  { %11 = vsyncpa [#allocation3], 0  ;;  %s1077_s0 = inlined_call_operand.hbm [shape: bf16[16,256], index: 0, kind: input, shape index: {}]   ;;  %s1078_s1 = inlined_call_operand.hbm [shape: bf16[256,128], index: 1, kind: input, shape index: {}]   ;;  %s1079_s2 = inlined_call_operand.vmem [shape: f32[1,128], index: 2, kind: input, shape index: {}]   ;;  %s1080_s3 = inlined_call_operand.vmem [shape: f32[1,128], index: 3, kind: input, shape index: {}]   ;;  %s1081_s4 = inlined_call_operand.hbm [shape: f32[16,128], index: 4, kind: output, shape index: {0}]   ;;  %s1082_s5 = inlined_call_operand.vmem [shape: f32[16,1], index: 5, kind: output, shape index: {1}]  }
   0x1   :  { %13 = vsyncpa [#allocation3 + $0x1], 0 }
   0x2   :  { %14 = vsyncpa [#allocation6], 0 }
   0x3   :  { %15 = vsyncpa [#allocation4], 0 }
   0x4   :  { %17 = vsyncpa [#allocation4 + $0x1], 0  ;;  %s923_s18 = smov 0   ;;  %s925_s19 = smov 0  }
   0x5   :  { %s927_s20 = smov 0   ;;  %s929_s21 = smov 0  }
   0x6 LB: > { %s180_s24 = sshll.u32 %s1078_s1, 4  ;;  %s947_s25 = sadd.s32 4294967295, %s888_s21   ;;  %s888_s21 = sphi %s929_s21, %s1092_s21   ;;  %s884_s20 = sphi %s927_s20, %s1091_s20   ;;  %s880_s19 = sphi %s925_s19, %s1090_s19   ;;  %s876_s18 = sphi %s923_s18, %s1089_s18   ;;  %s181_s24 = int_to_ptr.hbm [resolvable:$true] %s180_s24 }
   0x7   : > { %p599_p0 = scmp.ge.s32.totalorder %s888_s21, 1  ;;  %p44_p1 = scmp.eq.s32.totalorder %s947_s25, 0 }
   0x8   : > { %p169_p2 = scmp.lt.s32.totalorder %s888_s21, 3  ;;  %s890_s27 = smov [#allocation5]  }
   0x9   : > { %s182_s28 = sshll.u32 %s890_s27, 4  ;;  %s891_s29 = smov 64   ;;  %s183_s28 = int_to_ptr.vmem [resolvable:$true] %s182_s28 }
   0xa   : > { %p952_p3 = pnand %p599_p0, %p169_p2  ;;  %s892_s30 = smov 4  }
   0xb   : > { %s598_s6 = sadd.s32 4294967294, %s888_s21   ;;  %s963_s7 = sadd.s32 1, %s888_s21  }
   0xc   : > { %p703_p4 = pneg %p952_p3  ;;  %s30_s8 = sadd.s32 1, %s884_s20 }
   0xd   : > { %s27_s9 = ssub.s32 %s888_s21, %s963_s7  ;;  %p37_p7 = scmp.ne.s32.totalorder %s884_s20, %s880_s19 }
   0xe   : > { %p704_p6 = pnand %p703_p4, %p44_p1  ;;  %p28_p8 = scmp.eq.s32.totalorder %s27_s9, 0 }
   0xf   : > { %p38_p9 = scmp.eq.s32.totalorder %s888_s21, 0  ;;  %p43_p10 = scmp.ne.s32.totalorder %s880_s19, %s876_s18 }
  0x10   : > { %706 = dma.hbm_to_vmem [thread:$0]  (!%p704_p6), %s181_s24, 2048, %s183_s28, [#allocation6], %s891_s29, %s891_s29, %s892_s30  }
  0x11   : > { %p130_p11 = scmp.eq.s32.totalorder %s947_s25, 1  ;;  %p979_p12 = por %p44_p1, %p43_p10 }
  0x12   : > { %s975_s10 = scalar_select %p28_p8, %s884_s20, %s30_s8  }
  0x13   : > { %p983_p13 = por %p130_p11, %p37_p7  ;;  %p136_p0 = scmp.eq.s32.totalorder %s598_s6, 1 }
  0x14   : > { %p39_p2 = por %p38_p9, %p37_p7  ;;  %s202_s13 = sand.u32 1, %s884_s20  }
  0x15   : > { %p988_p4 = por %p136_p0, %p43_p10  ;;  %p716_p6 = scmp.lt.s32.totalorder %s888_s21, 2 }
  0x16   : > { %s602_s15 = sshll.u32 %s202_s13, 3  ;;  %s678_s16 = sshll.u32 %s888_s21, 3 }
  0x17   : > { %s211_s23 = scalar_lea.hbm %s1077_s0, %s678_s16  ;;  %s206_s27 = scalar_lea.vmem [#allocation2], %s602_s15 }
  0x18   : > { %s213_s24 = sshll.u32 %s211_s23, 4  ;;  %s215_s28 = sshll.u32 %s206_s27, 4  ;;  %s214_s24 = int_to_ptr.hbm [resolvable:$true] %s213_s24  ;;  %s216_s28 = int_to_ptr.vmem [resolvable:$true] %s215_s28 }
  0x19   : > { %p997_p8 = pnand %p716_p6, %p39_p2  ;;  %s203_s30 = scalar_lea.sflag [#allocation3], %s202_s13 }
  0x1a   : > { %s788_s6 = sshra.s32 %s214_s24, 4  ;;  %s795_s15 = scalar_lea.hbm %s1077_s0, 16  ;;  %s789_s6 = int_to_ptr.hbm [resolvable:$true] %s788_s6 }
  0x1b   : > { %s790_s8 = scalar_lea.hbm %s789_s6, 8  ;;  %p792_p9 = pneg %p997_p8 }
  0x1c   : > { %p791_p7 = scmp.ne.s32.totalorder %s789_s6, %s790_s8  ;;  %p796_p0 = scmp.lt.s32.totalorder %s789_s6, %s1077_s0 }
  0x1d   : > { %p797_p2 = scmp.lt.s32.totalorder %s795_s15, %s790_s8 }
  0x1e   : > { %p793_p10 = pnand %p792_p9, %p791_p7 }
  0x1f   : > { %p798_p6 = por %p797_p2, %p796_p0 }
  0x20   : > { %p794_p11 = pneg %p793_p10 }
  0x22   : > { %p799_p5 = pnand %p798_p6, %p794_p11 }
  0x24   : > { %802 = shalt.err (!%p799_p5)
}
  0x25   : > { %710 = dma.hbm_to_vmem [thread:$0]  (!%p997_p8), %s214_s24, 128, %s216_s28, %s203_s30  }
  0x26   : > { %224 = sbr.rel (%p952_p3) target bundleno = 352 (0x160), region = 36  ;;  %s1014_s13 = sand.u32 (!%p952_p3), 1, %s880_s19  }
  0x27   : > { %s606_s23 = sshll.u32 (!%p952_p3), %s1014_s13, 3  ;;  %s227_s27 = scalar_lea.sflag (!%p952_p3), [#allocation3], %s1014_s13 }
  0x28   : > { %s1020_s6 = scalar_lea.vmem (!%p952_p3), [#allocation2], %s606_s23 }
  0x2b   : > { %863 = dma.done.wait (%p979_p12), %s227_s27, 128  }
  0x2c   : > { %865 = vsyncadd (%p979_p12), %s227_s27, 4294967168 }
  0x2d   : > { %867 = dma.done.wait (%p44_p1), [#allocation6], 2048  }
  0x2e   : > { %869 = vsyncadd (%p44_p1), [#allocation6], 4294965248  ;;  %v686_v0 = vld [vmem:[#allocation5 + $0x38] sm:$0xff]  ;;  %v685_v2 = vld [vmem:[#allocation5 + $0x30] sm:$0xff]  ;;  %p267_p1 = scmp.lt.s32.totalorder %s947_s25, 1  ;;  %s675_s29 = sshll.u32 %s947_s25, 3 }
  0x2f   : > { %v694_v1 = vld [vmem:[#allocation5 + $0x78] sm:$0xff]  ;;  %411 = vmatpush.bf16.msra.mxu0 %v686_v0  ;;  %v693_v3 = vld [vmem:[#allocation5 + $0x70] sm:$0xff]  ;;  %v684_v4 = vld [vmem:[#allocation5 + $0x28] sm:$0xff]  ;;  %s486_s9 = scalar_lea.hbm %s1081_s4, %s675_s29  ;;  %s260_s15 = scalar_lea.vmem [#allocation7], %s606_s23  ;;  %vm457_vm4 = vcmask 7168  }
  0x30   : > { %424 = vmatpush.bf16.msra.mxu1 %v694_v1  ;;  %v692_v5 = vld [vmem:[#allocation5 + $0x68] sm:$0xff]  ;;  %v683_v6 = vld [vmem:[#allocation5 + $0x20] sm:$0xff]  ;;  %v682_v8 = vld [vmem:[#allocation5 + $0x18] sm:$0xff]  ;;  %s1094_s25 = smov (!%p267_p1, %s947_s25), 1  ;;  %s488_s17 = sshll.u32 %s260_s15, 4  ;;  %s489_s17 = int_to_ptr.vmem [resolvable:$true] %s488_s17 }
  0x31   : > { %v691_v7 = vld [vmem:[#allocation5 + $0x60] sm:$0xff]  ;;  %v690_v9 = vld [vmem:[#allocation5 + $0x58] sm:$0xff]  ;;  %v681_v10 = vld [vmem:[#allocation5 + $0x10] sm:$0xff]  ;;  %s609_s16 = sshll.u32 %s1094_s25, 3  ;;  %s490_s22 = sshll.u32 %s486_s9, 4  ;;  %s491_s22 = int_to_ptr.hbm [resolvable:$true] %s490_s22 }
  0x32   : > { %v689_v11 = vld [vmem:[#allocation5 + $0x50] sm:$0xff]  ;;  %v680_v12 = vld [vmem:[#allocation5 + $0x8] sm:$0xff]  ;;  %v679_v17 = vld [vmem:[#allocation5] sm:$0xff]  ;;  %s270_s26 = scalar_lea.vmem %s1082_s5, %s609_s16  ;;  %s472_s25 = scalar_lea.sflag [#allocation4], %s1014_s13 }
  0x33   : > { %412 = vmatpush.bf16.msra.mxu0 %v685_v2  ;;  %v688_v13 = vld [vmem:[#allocation5 + $0x48] sm:$0xff]  ;;  %v271_v14 = vld [vmem:[%s1020_s6] sm:$0xff]  ;;  %v687_v18 = vld [vmem:[#allocation5 + $0x40] sm:$0xff]  ;;  %s832_s23 = sshra.s32 %s491_s22, 4  ;;  %s838_s29 = scalar_lea.hbm %s1081_s4, 16  ;;  %s833_s23 = int_to_ptr.hbm [resolvable:$true] %s832_s23 }
  0x34   : > { %425 = vmatpush.bf16.msra.mxu1 %v693_v3  ;;  %v309_v15 = vunpack.c.l.b16 %v271_v14  ;;  %v310_v16 = vunpack.c.h.b16 %v271_v14  ;;  %v754_v21 = vld [vmem:[%s1079_s2] ss:$0 sm:$0xff]  ;;  %s834_s11 = scalar_lea.hbm %s833_s23, 8  ;;  %p839_p8 = scmp.lt.s32.totalorder %s833_s23, %s1081_s4 }
  0x35   : > { %v755_v25 = vld [vmem:[%s1080_s3] ss:$0 sm:$0xff]  ;;  %p835_p3 = scmp.ne.s32.totalorder %s833_s23, %s834_s11  ;;  %p840_p7 = scmp.lt.s32.totalorder %s838_s29, %s834_s11 }
  0x36   : > { %v311_v19 = vpack.c.b16 %v309_v15, %v309_v15  ;;  %v312_v20 = vpack.c.b16 %v310_v16, %v310_v16 }
  0x37   : > { %413 = vmatpush.bf16.msra.mxu0 %v684_v4  ;;  %p836_p5 = pnand %p835_p3, %p983_p13  ;;  %p841_p9 = por %p840_p7, %p839_p8 }
  0x38   : > { %426 = vmatpush.bf16.msra.mxu1 %v692_v5 }
  0x39   : > { %p837_p12 = pneg %p836_p5 }
  0x3b   : > { %414 = vmatpush.bf16.msra.mxu0 %v683_v6  ;;  %p842_p10 = pnand %p841_p9, %p837_p12 }
  0x3c   : > { %427 = vmatpush.bf16.msra.mxu1 %v691_v7 }
  0x3f   : > { %415 = vmatpush.bf16.msra.mxu0 %v682_v8 }
  0x40   : > { %428 = vmatpush.bf16.msra.mxu1 %v690_v9 }
  0x43   : > { %416 = vmatpush.bf16.msra.mxu0 %v681_v10 }
  0x44   : > { %429 = vmatpush.bf16.msra.mxu1 %v689_v11 }
  0x47   : > { %417 = vmatpush.bf16.msra.mxu0 %v680_v12 }
  0x48   : > { %430 = vmatpush.bf16.msra.mxu1 %v688_v13 }
  0x4b   : > { %418 = vmatpush.bf16.msra.mxu0 %v679_v17 }
  0x4c   : > { %431 = vmatpush.bf16.msra.mxu1 %v687_v18 }
  0x4e   : > { %419 = vmatmul.bf16.vlgmr.msra.gmra.mxu0 %v311_v19 }
  0x4f   : > { %432 = vmatmul.bf16.vlgmr.msra.gmra.mxu1 %v312_v20 }
  0xcb   : > { %v420_v22 = vpop.f32.mrf.mxu0 }
  0xcc   : > { %v433_v23 = vpop.f32.mrf.mxu1  ;;  %v421_v24 = vadd.f32 %v754_v21, %v420_v22 }
  0xce   : > { %v434_v26 = vadd.f32 %v433_v23, %v421_v24 }
  0xd0   : > { %v441_v27 = vmul.f32 %v755_v25, %v434_v26 }
  0xd2   : > { %v442_v28 = vmul.f32 %v441_v27, %v441_v27 }
  0xd3   : > { %v422_v29 = vpop.f32.mrf.mxu0 }
  0xd4   : > { %v435_v30 = vpop.f32.mrf.mxu1  ;;  %443 = vadd.xlane.f32.xlu0 %v442_v28 }
 0x147   : > { %v444_v31 = vpop.xlane.xlu0 %443 }
 0x148   : > { %756 = vrsqrt.f32 %v444_v31  ;;  %vm465_vm1 = vweird.f32 %v444_v31  ;;  %vm452_vm3 = vcmp.eq.f32.partialorder %v444_v31, inf  ;;  %v455_v40 = vand.u32 2147483648, %v444_v31 }
 0x149   : > { %vm454_vm5 = vcmp.eq.f32.partialorder %v444_v31, 0.0 }
 0x14e   : > { %v757_v32 = vpop.eup %756 }
 0x14f   : > { %v446_v33 = vmul.f32 %v757_v32, %v444_v31  ;;  %vm466_vm0 = vweird.f32 %v757_v32 }
 0x150   : > { %vm467_vm2 = vmor %vm465_vm1, %vm466_vm0 }
 0x151   : > { %v447_v34 = vmul.f32 %v757_v32, %v446_v33 }
 0x153   : > { %v448_v35 = vmul.f32 0.5, %v447_v34 }
 0x155   : > { %v449_v36 = vsub.f32 1.5, %v448_v35 }
 0x157   : > { %v450_v37 = vmul.f32 %v757_v32, %v449_v36 }
 0x159   : > { %v451_v38 = vmul.f32 %v450_v37, %v444_v31  ;;  %v468_v39 = vsel %vm467_vm2, %v757_v32, %v450_v37 }
 0x15a   : > { %v469_v41 = vmul.f32 %v468_v39, %v441_v27 }
 0x15b   : > { %v453_v42 = vsel %vm452_vm3, %v444_v31, %v451_v38 }
 0x15c   : > { %v456_v43 = vsel %vm454_vm5, %v455_v40, %v453_v42  ;;  %470 = vst [vmem:[%s260_s15] sm:$0xff] %v469_v41 }
 0x15d   : > { %458 = vst.msk [vmem:[%s270_s26] sm:$0xff] %vm457_vm4, %v456_v43 }
 0x15e   : > { %845 = shalt.err (!%p842_p10)
}
 0x15f   : > { %701 = dma.vmem_to_hbm [thread:$0]  (%p983_p13), %s489_s17, 128, %s491_s22, %s472_s25  }
 0x160 PF: > { %s505_s13 = sand.u32 1, %s876_s18   ;;  %p1088_p11 = scmp.ge.s32.totalorder %s888_s21, 2 }
 0x161   : > { %s506_s9 = scalar_lea.sflag [#allocation4], %s505_s13 }
 0x162   : > { %p712_p0 = pnand %p1088_p11, %p988_p4 }
 0x164   : > { %p713_p2 = pneg %p712_p0 }
 0x166   : > { %871 = dma.done.wait (%p713_p2), %s506_s9, 128  }
 0x167   : > { %873 = vsyncadd (%p713_p2), %s506_s9, 4294967168  ;;  %p20_p6 = scmp.ge.s32.totalorder %s963_s7, 4   ;;  %s1089_s18 = smov %s880_s19 }
 0x168   : > { %s1090_s19 = smov %s884_s20  ;;  %s1091_s20 = smov %s975_s10 }
 0x169   : > { %s1092_s21 = smov %s963_s7  ;;  %22 = sbr.rel (!%p20_p6) target bundleno = 6 (0x6), region = 97 }
 0x16e   :  { %519 = vsyncpa [#allocation3], 1 }
 0x16f   :  { %521 = vsyncpa [#allocation3 + $0x1], 1 }
 0x170   :  { %522 = vsyncpa [#allocation6], 1 }
 0x171   :  { %523 = vsyncpa [#allocation4], 1 }
 0x172   :  { %525 = vsyncpa [#allocation4 + $0x1], 1 }

</bundles_post_ra>
